<compile_context>
chip_gen: v6e
topology: v6e:2x2x1
jax: 0.10.0
libtpu: 0.0.40
codegen_flags: <defaults>
</compile_context>

<pallas_src>
import functools

import jax
import jax.numpy as jnp
from jax import lax
from jax.experimental import pallas as pl
from jax.experimental.pallas import tpu as pltpu


def transformer_head_kernel(x_ref, wqkv_ref, bqkv_ref, wz_ref, bz_ref, out_ref,
                            *, num_heads, head_dim):
    """One batch element per grid step; fused QKV + all heads + output projection."""
    S = x_ref.shape[1]
    H = head_dim
    QH = num_heads * H
    n_out = out_ref.shape[2]

    # Fused Q/K/V projection for all heads: one MXU matmul, one bias add, one ReLU.
    x = x_ref[0].astype(jnp.bfloat16)                                    # (S, E)
    qkv = jnp.dot(x, wqkv_ref[...], preferred_element_type=jnp.float32)  # (S, 3*QH) f32
    qkv = jnp.maximum(qkv + bqkv_ref[...], 0.0)                          # bias + ReLU
    qkv = qkv.astype(jnp.bfloat16)

    # TODO(synk): nn.Dropout on QK / ZF is inference-mode identity here (eval mode).
    acc = jnp.zeros((S, n_out), jnp.float32)
    for h in range(num_heads):                       # static unroll (heads = 4)
        q = qkv[:, h * H:(h + 1) * H]                # (S, H) — 1/sqrt(E) pre-folded
        k = qkv[:, QH + h * H:QH + (h + 1) * H]      # (S, H)
        v = qkv[:, 2 * QH + h * H:2 * QH + (h + 1) * H]

        # q @ k^T via dot_general contracting the last dims (no explicit transpose).
        s = lax.dot_general(q, k, (((1,), (1,)), ((), ())),
                            preferred_element_type=jnp.float32)          # (S, S)

        # torch softmax dim=1 on (B,S,S) -> axis 0 here.
        a1 = jnp.exp(s - jnp.max(s, axis=0, keepdims=True))
        a1 = a1 * pl.reciprocal(jnp.sum(a1, axis=0, keepdims=True), approx=True)
        # torch softmax dim=2 -> axis 1 here.
        a2 = jnp.exp(a1 - jnp.max(a1, axis=1, keepdims=True))
        a2 = a2 * pl.reciprocal(jnp.sum(a2, axis=1, keepdims=True), approx=True)

        z = jnp.dot(a2.astype(jnp.bfloat16), v,
                    preferred_element_type=jnp.float32)                  # (S, H)
        # Accumulated output projection — replaces concat(heads) + single big matmul.
        acc = acc + jnp.dot(z.astype(jnp.bfloat16), wz_ref[h],
                            preferred_element_type=jnp.float32)          # (S, n_out)

    out_ref[0] = (acc + bz_ref[...]).astype(out_ref.dtype)


def transformer_head(x, params):
    wq, bq, wk, bk, wv, bv, wz, bz = params
    B, S, E = x.shape
    heads, _, H = wq.shape
    H_out = wz.shape[1]
    scale = 1.0 / (E ** 0.5)

    # --- one-time param packing (head-major columns: [Q_h0..Q_h3 | K_h0.. | V_h0..]) ---
    def pack_w(w):   # (heads, E, H) -> (E, heads*H)
        return jnp.transpose(w, (1, 0, 2)).reshape(E, heads * H)

    def pack_b(b):   # (heads, 1, H) -> (heads*H,)
        return b[:, 0, :].reshape(heads * H)

    # Fold the 1/sqrt(E) attention scale into the Q weights/bias (valid through ReLU).
    w_qkv = jnp.concatenate(
        [pack_w(wq) * scale, pack_w(wk), pack_w(wv)], axis=1).astype(jnp.bfloat16)
    b_qkv = jnp.concatenate(
        [pack_b(bq) * scale, pack_b(bk), pack_b(bv)])[None, :]            # (1, 3*heads*H) f32
    wz_h = wz.reshape(heads, H, H_out).astype(jnp.bfloat16)               # (heads, H, H_out)
    bz2 = bz.reshape(1, H_out)                                            # (1, H_out) f32

    kernel = functools.partial(
        transformer_head_kernel, num_heads=heads, head_dim=H)

    return pl.pallas_call(
        kernel,
        out_shape=jax.ShapeDtypeStruct((B, S, H_out), x.dtype),
        grid=(B,),
        in_specs=[
            pl.BlockSpec((1, S, E), lambda b: (b, 0, 0)),                 # x: one batch slice
            pl.BlockSpec((E, 3 * heads * H), lambda b: (0, 0)),           # packed W_qkv
            pl.BlockSpec((1, 3 * heads * H), lambda b: (0, 0)),           # packed bias
            pl.BlockSpec((heads, H, H_out), lambda b: (0, 0, 0)),         # wz per head
            pl.BlockSpec((1, H_out), lambda b: (0, 0)),                   # bz
        ],
        out_specs=pl.BlockSpec((1, S, H_out), lambda b: (b, 0, 0)),
        compiler_params=pltpu.CompilerParams(
            dimension_semantics=("parallel",)),                           # v7x: 2 TCs split batch
    )(x, w_qkv, b_qkv, wz_h, bz2)


def reference(x, params):
    """Pure-JAX f32 reference mirroring the PyTorch forward (eval mode)."""
    wq, bq, wk, bk, wv, bv, wz, bz = params
    E = x.shape[-1]
    zs = []
    for h in range(wq.shape[0]):
        q = jax.nn.relu(x @ wq[h] + bq[h])
        k = jax.nn.relu(x @ wk[h] + bk[h])
        v = jax.nn.relu(x @ wv[h] + bv[h])
        qk = jnp.einsum('bsh,bth->bst', q, k)
        a1 = jax.nn.softmax(qk / (E ** 0.5), axis=1)
        a2 = jax.nn.softmax(a1, axis=2)
        zs.append(jnp.einsum('bst,bth->bsh', a2, v))
    zall = jnp.concatenate(zs, axis=2)
    return zall @ wz + bz


def init_params(key, embed_dim, hidden_units_sa, hidden_units_out, sa_heads):
    ks = jax.random.split(key, 8)
    sc = 0.1
    wq = sc * jax.random.normal(ks[0], (sa_heads, embed_dim, hidden_units_sa), jnp.float32)
    bq = sc * jax.random.normal(ks[1], (sa_heads, 1, hidden_units_sa), jnp.float32)
    wk = sc * jax.random.normal(ks[2], (sa_heads, embed_dim, hidden_units_sa), jnp.float32)
    bk = sc * jax.random.normal(ks[3], (sa_heads, 1, hidden_units_sa), jnp.float32)
    wv = sc * jax.random.normal(ks[4], (sa_heads, embed_dim, hidden_units_sa), jnp.float32)
    bv = sc * jax.random.normal(ks[5], (sa_heads, 1, hidden_units_sa), jnp.float32)
    wz = sc * jax.random.normal(ks[6], (sa_heads * hidden_units_sa, hidden_units_out), jnp.float32)
    bz = sc * jax.random.normal(ks[7], (1, 1, hidden_units_out), jnp.float32)
    return (wq, bq, wk, bk, wv, bv, wz, bz)


if __name__ == "__main__":
    B, S, E = 2, 8, 32            # batch, seq_len, embed_dim
    H_SA, H_OUT, HEADS = 16, 32, 4

    key = jax.random.PRNGKey(0)
    k_x, k_p = jax.random.split(key)
    x = jax.random.normal(k_x, (B, S, E), jnp.float32)
    params = init_params(k_p, E, H_SA, H_OUT, HEADS)

    out = jax.block_until_ready(transformer_head(x, params))
    ref = jax.block_until_ready(reference(x, params))

    assert out.shape == (B, S, H_OUT), out.shape
    # Tolerance relaxed vs f32 reference: matmul operands are bf16 and the softmax
    # denominators use approx reciprocal (per perf review).
    assert jnp.allclose(out, ref, atol=3e-2, rtol=3e-2), "mismatch vs reference"
    print("KERNEL_OK")
</pallas_src>

<mosaic_0001>
module attributes {stable_mosaic.version = 11 : i64} {
  func.func @transformer_head_kernel(%arg0: i32, %arg1: memref<1x8x32xf32, #tpu.memory_space<vmem>>, %arg2: memref<32x192xbf16, #tpu.memory_space<vmem>>, %arg3: memref<1x192xf32, #tpu.memory_space<vmem>>, %arg4: memref<4x16x32xbf16, #tpu.memory_space<vmem>>, %arg5: memref<1x32xf32, #tpu.memory_space<vmem>>, %arg6: memref<1x8x32xf32, #tpu.memory_space<vmem>>) attributes {dimension_semantics = [#tpu.dimension_semantics<parallel>], iteration_bounds = array<i64: 2>, scalar_prefetch = 0 : i64, scratch_operands = 0 : i64, tpu.core_type = #tpu.core_type<tc>, window_params = [{transform_indices = @transform_0, window_bounds = array<i64: 1, 8, 32>}, {pipeline_mode = #tpu.pipeline_mode<synchronous>, transform_indices = @transform_1, window_bounds = array<i64: 32, 192>}, {pipeline_mode = #tpu.pipeline_mode<synchronous>, transform_indices = @transform_2, window_bounds = array<i64: 1, 192>}, {pipeline_mode = #tpu.pipeline_mode<synchronous>, transform_indices = @transform_3, window_bounds = array<i64: 4, 16, 32>}, {pipeline_mode = #tpu.pipeline_mode<synchronous>, transform_indices = @transform_4, window_bounds = array<i64: 1, 32>}, {transform_indices = @transform_5, window_bounds = array<i64: 1, 8, 32>}]} {
    %c0 = arith.constant 0 : index
    %c0_0 = arith.constant 0 : index
    %c0_1 = arith.constant 0 : index
    %0 = vector.load %arg1[%c0, %c0_0, %c0_1] : memref<1x8x32xf32, #tpu.memory_space<vmem>>, vector<1x8x32xf32>
    %1 = vector.shape_cast %0 : vector<1x8x32xf32> to vector<8x32xf32>
    %2 = arith.truncf %1 : vector<8x32xf32> to vector<8x32xbf16>
    %c0_2 = arith.constant 0 : index
    %c0_3 = arith.constant 0 : index
    %3 = vector.load %arg2[%c0_2, %c0_3] : memref<32x192xbf16, #tpu.memory_space<vmem>>, vector<32x192xbf16>
    %cst = arith.constant dense<0.000000e+00> : vector<8x192xf32>
    %4 = tpu.matmul %2, %3, %cst {dimension_numbers = #tpu.dot_dimension_numbers<[1], [0], [0], [1], [0, 0, 1, 1], [], []>} : vector<8x32xbf16>, vector<32x192xbf16>, vector<8x192xf32> -> vector<8x192xf32>
    %c0_4 = arith.constant 0 : index
    %c0_5 = arith.constant 0 : index
    %5 = vector.load %arg3[%c0_4, %c0_5] : memref<1x192xf32, #tpu.memory_space<vmem>>, vector<1x192xf32>
    %6 = vector.broadcast %5 : vector<1x192xf32> to vector<8x192xf32>
    %7 = arith.addf %4, %6 : vector<8x192xf32>
    %cst_6 = arith.constant 0.000000e+00 : f32
    %8 = vector.broadcast %cst_6 : f32 to vector<8x192xf32>
    %9 = arith.maximumf %7, %8 : vector<8x192xf32>
    %10 = arith.truncf %9 : vector<8x192xf32> to vector<8x192xbf16>
    %cst_7 = arith.constant 0.000000e+00 : f32
    %11 = vector.broadcast %cst_7 : f32 to vector<8x32xf32>
    %12 = vector.extract_strided_slice %10 {offsets = [0, 0], sizes = [8, 16], strides = [1, 1]} : vector<8x192xbf16> to vector<8x16xbf16>
    %13 = vector.extract_strided_slice %10 {offsets = [0, 64], sizes = [8, 16], strides = [1, 1]} : vector<8x192xbf16> to vector<8x16xbf16>
    %14 = vector.extract_strided_slice %10 {offsets = [0, 128], sizes = [8, 16], strides = [1, 1]} : vector<8x192xbf16> to vector<8x16xbf16>
    %cst_8 = arith.constant dense<0.000000e+00> : vector<8x8xf32>
    %15 = tpu.matmul %12, %13, %cst_8 {dimension_numbers = #tpu.dot_dimension_numbers<[1], [1], [0], [0], [0, 0, 1, 0], [], []>} : vector<8x16xbf16>, vector<8x16xbf16>, vector<8x8xf32> -> vector<8x8xf32>
    %cst_9 = arith.constant dense<0xFF800000> : vector<8xf32>
    %16 = vector.multi_reduction <maximumf>, %15, %cst_9 [0] : vector<8x8xf32> to vector<8xf32>
    %17 = vector.shape_cast %16 : vector<8xf32> to vector<1x8xf32>
    %18 = vector.broadcast %17 : vector<1x8xf32> to vector<8x8xf32>
    %19 = arith.subf %15, %18 : vector<8x8xf32>
    %20 = math.exp %19 : vector<8x8xf32>
    %cst_10 = arith.constant dense<0.000000e+00> : vector<8xf32>
    %21 = vector.multi_reduction <add>, %20, %cst_10 [0] : vector<8x8xf32> to vector<8xf32>
    %22 = vector.shape_cast %21 : vector<8xf32> to vector<1x8xf32>
    %23 = tpu.reciprocal %22 {approx = true} : vector<1x8xf32> -> vector<1x8xf32>
    %24 = vector.broadcast %23 : vector<1x8xf32> to vector<8x8xf32>
    %25 = arith.mulf %20, %24 : vector<8x8xf32>
    %cst_11 = arith.constant dense<0xFF800000> : vector<8xf32>
    %26 = vector.multi_reduction <maximumf>, %25, %cst_11 [1] : vector<8x8xf32> to vector<8xf32>
    %27 = vector.shape_cast %26 : vector<8xf32> to vector<8x1xf32>
    %28 = vector.broadcast %27 : vector<8x1xf32> to vector<8x8xf32>
    %29 = arith.subf %25, %28 : vector<8x8xf32>
    %30 = math.exp %29 : vector<8x8xf32>
    %cst_12 = arith.constant dense<0.000000e+00> : vector<8xf32>
    %31 = vector.multi_reduction <add>, %30, %cst_12 [1] : vector<8x8xf32> to vector<8xf32>
    %32 = vector.shape_cast %31 : vector<8xf32> to vector<8x1xf32>
    %33 = tpu.reciprocal %32 {approx = true} : vector<8x1xf32> -> vector<8x1xf32>
    %34 = vector.broadcast %33 : vector<8x1xf32> to vector<8x8xf32>
    %35 = arith.mulf %30, %34 : vector<8x8xf32>
    %36 = arith.truncf %35 : vector<8x8xf32> to vector<8x8xbf16>
    %cst_13 = arith.constant dense<0.000000e+00> : vector<8x16xf32>
    %37 = tpu.matmul %36, %14, %cst_13 {dimension_numbers = #tpu.dot_dimension_numbers<[1], [0], [0], [1], [0, 0, 1, 1], [], []>} : vector<8x8xbf16>, vector<8x16xbf16>, vector<8x16xf32> -> vector<8x16xf32>
    %38 = arith.truncf %37 : vector<8x16xf32> to vector<8x16xbf16>
    %c0_14 = arith.constant 0 : index
    %c0_15 = arith.constant 0 : index
    %c0_16 = arith.constant 0 : index
    %39 = vector.load %arg4[%c0_14, %c0_15, %c0_16] : memref<4x16x32xbf16, #tpu.memory_space<vmem>>, vector<1x16x32xbf16>
    %40 = vector.shape_cast %39 : vector<1x16x32xbf16> to vector<16x32xbf16>
    %cst_17 = arith.constant dense<0.000000e+00> : vector<8x32xf32>
    %41 = tpu.matmul %38, %40, %cst_17 {dimension_numbers = #tpu.dot_dimension_numbers<[1], [0], [0], [1], [0, 0, 1, 1], [], []>} : vector<8x16xbf16>, vector<16x32xbf16>, vector<8x32xf32> -> vector<8x32xf32>
    %42 = arith.addf %11, %41 : vector<8x32xf32>
    %43 = vector.extract_strided_slice %10 {offsets = [0, 16], sizes = [8, 16], strides = [1, 1]} : vector<8x192xbf16> to vector<8x16xbf16>
    %44 = vector.extract_strided_slice %10 {offsets = [0, 80], sizes = [8, 16], strides = [1, 1]} : vector<8x192xbf16> to vector<8x16xbf16>
    %45 = vector.extract_strided_slice %10 {offsets = [0, 144], sizes = [8, 16], strides = [1, 1]} : vector<8x192xbf16> to vector<8x16xbf16>
    %cst_18 = arith.constant dense<0.000000e+00> : vector<8x8xf32>
    %46 = tpu.matmul %43, %44, %cst_18 {dimension_numbers = #tpu.dot_dimension_numbers<[1], [1], [0], [0], [0, 0, 1, 0], [], []>} : vector<8x16xbf16>, vector<8x16xbf16>, vector<8x8xf32> -> vector<8x8xf32>
    %cst_19 = arith.constant dense<0xFF800000> : vector<8xf32>
    %47 = vector.multi_reduction <maximumf>, %46, %cst_19 [0] : vector<8x8xf32> to vector<8xf32>
    %48 = vector.shape_cast %47 : vector<8xf32> to vector<1x8xf32>
    %49 = vector.broadcast %48 : vector<1x8xf32> to vector<8x8xf32>
    %50 = arith.subf %46, %49 : vector<8x8xf32>
    %51 = math.exp %50 : vector<8x8xf32>
    %cst_20 = arith.constant dense<0.000000e+00> : vector<8xf32>
    %52 = vector.multi_reduction <add>, %51, %cst_20 [0] : vector<8x8xf32> to vector<8xf32>
    %53 = vector.shape_cast %52 : vector<8xf32> to vector<1x8xf32>
    %54 = tpu.reciprocal %53 {approx = true} : vector<1x8xf32> -> vector<1x8xf32>
    %55 = vector.broadcast %54 : vector<1x8xf32> to vector<8x8xf32>
    %56 = arith.mulf %51, %55 : vector<8x8xf32>
    %cst_21 = arith.constant dense<0xFF800000> : vector<8xf32>
    %57 = vector.multi_reduction <maximumf>, %56, %cst_21 [1] : vector<8x8xf32> to vector<8xf32>
    %58 = vector.shape_cast %57 : vector<8xf32> to vector<8x1xf32>
    %59 = vector.broadcast %58 : vector<8x1xf32> to vector<8x8xf32>
    %60 = arith.subf %56, %59 : vector<8x8xf32>
    %61 = math.exp %60 : vector<8x8xf32>
    %cst_22 = arith.constant dense<0.000000e+00> : vector<8xf32>
    %62 = vector.multi_reduction <add>, %61, %cst_22 [1] : vector<8x8xf32> to vector<8xf32>
    %63 = vector.shape_cast %62 : vector<8xf32> to vector<8x1xf32>
    %64 = tpu.reciprocal %63 {approx = true} : vector<8x1xf32> -> vector<8x1xf32>
    %65 = vector.broadcast %64 : vector<8x1xf32> to vector<8x8xf32>
    %66 = arith.mulf %61, %65 : vector<8x8xf32>
    %67 = arith.truncf %66 : vector<8x8xf32> to vector<8x8xbf16>
    %cst_23 = arith.constant dense<0.000000e+00> : vector<8x16xf32>
    %68 = tpu.matmul %67, %45, %cst_23 {dimension_numbers = #tpu.dot_dimension_numbers<[1], [0], [0], [1], [0, 0, 1, 1], [], []>} : vector<8x8xbf16>, vector<8x16xbf16>, vector<8x16xf32> -> vector<8x16xf32>
    %69 = arith.truncf %68 : vector<8x16xf32> to vector<8x16xbf16>
    %c1 = arith.constant 1 : index
    %c0_24 = arith.constant 0 : index
    %c0_25 = arith.constant 0 : index
    %70 = vector.load %arg4[%c1, %c0_24, %c0_25] : memref<4x16x32xbf16, #tpu.memory_space<vmem>>, vector<1x16x32xbf16>
    %71 = vector.shape_cast %70 : vector<1x16x32xbf16> to vector<16x32xbf16>
    %cst_26 = arith.constant dense<0.000000e+00> : vector<8x32xf32>
    %72 = tpu.matmul %69, %71, %cst_26 {dimension_numbers = #tpu.dot_dimension_numbers<[1], [0], [0], [1], [0, 0, 1, 1], [], []>} : vector<8x16xbf16>, vector<16x32xbf16>, vector<8x32xf32> -> vector<8x32xf32>
    %73 = arith.addf %42, %72 : vector<8x32xf32>
    %74 = vector.extract_strided_slice %10 {offsets = [0, 32], sizes = [8, 16], strides = [1, 1]} : vector<8x192xbf16> to vector<8x16xbf16>
    %75 = vector.extract_strided_slice %10 {offsets = [0, 96], sizes = [8, 16], strides = [1, 1]} : vector<8x192xbf16> to vector<8x16xbf16>
    %76 = vector.extract_strided_slice %10 {offsets = [0, 160], sizes = [8, 16], strides = [1, 1]} : vector<8x192xbf16> to vector<8x16xbf16>
    %cst_27 = arith.constant dense<0.000000e+00> : vector<8x8xf32>
    %77 = tpu.matmul %74, %75, %cst_27 {dimension_numbers = #tpu.dot_dimension_numbers<[1], [1], [0], [0], [0, 0, 1, 0], [], []>} : vector<8x16xbf16>, vector<8x16xbf16>, vector<8x8xf32> -> vector<8x8xf32>
    %cst_28 = arith.constant dense<0xFF800000> : vector<8xf32>
    %78 = vector.multi_reduction <maximumf>, %77, %cst_28 [0] : vector<8x8xf32> to vector<8xf32>
    %79 = vector.shape_cast %78 : vector<8xf32> to vector<1x8xf32>
    %80 = vector.broadcast %79 : vector<1x8xf32> to vector<8x8xf32>
    %81 = arith.subf %77, %80 : vector<8x8xf32>
    %82 = math.exp %81 : vector<8x8xf32>
    %cst_29 = arith.constant dense<0.000000e+00> : vector<8xf32>
    %83 = vector.multi_reduction <add>, %82, %cst_29 [0] : vector<8x8xf32> to vector<8xf32>
    %84 = vector.shape_cast %83 : vector<8xf32> to vector<1x8xf32>
    %85 = tpu.reciprocal %84 {approx = true} : vector<1x8xf32> -> vector<1x8xf32>
    %86 = vector.broadcast %85 : vector<1x8xf32> to vector<8x8xf32>
    %87 = arith.mulf %82, %86 : vector<8x8xf32>
    %cst_30 = arith.constant dense<0xFF800000> : vector<8xf32>
    %88 = vector.multi_reduction <maximumf>, %87, %cst_30 [1] : vector<8x8xf32> to vector<8xf32>
    %89 = vector.shape_cast %88 : vector<8xf32> to vector<8x1xf32>
    %90 = vector.broadcast %89 : vector<8x1xf32> to vector<8x8xf32>
    %91 = arith.subf %87, %90 : vector<8x8xf32>
    %92 = math.exp %91 : vector<8x8xf32>
    %cst_31 = arith.constant dense<0.000000e+00> : vector<8xf32>
    %93 = vector.multi_reduction <add>, %92, %cst_31 [1] : vector<8x8xf32> to vector<8xf32>
    %94 = vector.shape_cast %93 : vector<8xf32> to vector<8x1xf32>
    %95 = tpu.reciprocal %94 {approx = true} : vector<8x1xf32> -> vector<8x1xf32>
    %96 = vector.broadcast %95 : vector<8x1xf32> to vector<8x8xf32>
    %97 = arith.mulf %92, %96 : vector<8x8xf32>
    %98 = arith.truncf %97 : vector<8x8xf32> to vector<8x8xbf16>
    %cst_32 = arith.constant dense<0.000000e+00> : vector<8x16xf32>
    %99 = tpu.matmul %98, %76, %cst_32 {dimension_numbers = #tpu.dot_dimension_numbers<[1], [0], [0], [1], [0, 0, 1, 1], [], []>} : vector<8x8xbf16>, vector<8x16xbf16>, vector<8x16xf32> -> vector<8x16xf32>
    %100 = arith.truncf %99 : vector<8x16xf32> to vector<8x16xbf16>
    %c2 = arith.constant 2 : index
    %c0_33 = arith.constant 0 : index
    %c0_34 = arith.constant 0 : index
    %101 = vector.load %arg4[%c2, %c0_33, %c0_34] : memref<4x16x32xbf16, #tpu.memory_space<vmem>>, vector<1x16x32xbf16>
    %102 = vector.shape_cast %101 : vector<1x16x32xbf16> to vector<16x32xbf16>
    %cst_35 = arith.constant dense<0.000000e+00> : vector<8x32xf32>
    %103 = tpu.matmul %100, %102, %cst_35 {dimension_numbers = #tpu.dot_dimension_numbers<[1], [0], [0], [1], [0, 0, 1, 1], [], []>} : vector<8x16xbf16>, vector<16x32xbf16>, vector<8x32xf32> -> vector<8x32xf32>
    %104 = arith.addf %73, %103 : vector<8x32xf32>
    %105 = vector.extract_strided_slice %10 {offsets = [0, 48], sizes = [8, 16], strides = [1, 1]} : vector<8x192xbf16> to vector<8x16xbf16>
    %106 = vector.extract_strided_slice %10 {offsets = [0, 112], sizes = [8, 16], strides = [1, 1]} : vector<8x192xbf16> to vector<8x16xbf16>
    %107 = vector.extract_strided_slice %10 {offsets = [0, 176], sizes = [8, 16], strides = [1, 1]} : vector<8x192xbf16> to vector<8x16xbf16>
    %cst_36 = arith.constant dense<0.000000e+00> : vector<8x8xf32>
    %108 = tpu.matmul %105, %106, %cst_36 {dimension_numbers = #tpu.dot_dimension_numbers<[1], [1], [0], [0], [0, 0, 1, 0], [], []>} : vector<8x16xbf16>, vector<8x16xbf16>, vector<8x8xf32> -> vector<8x8xf32>
    %cst_37 = arith.constant dense<0xFF800000> : vector<8xf32>
    %109 = vector.multi_reduction <maximumf>, %108, %cst_37 [0] : vector<8x8xf32> to vector<8xf32>
    %110 = vector.shape_cast %109 : vector<8xf32> to vector<1x8xf32>
    %111 = vector.broadcast %110 : vector<1x8xf32> to vector<8x8xf32>
    %112 = arith.subf %108, %111 : vector<8x8xf32>
    %113 = math.exp %112 : vector<8x8xf32>
    %cst_38 = arith.constant dense<0.000000e+00> : vector<8xf32>
    %114 = vector.multi_reduction <add>, %113, %cst_38 [0] : vector<8x8xf32> to vector<8xf32>
    %115 = vector.shape_cast %114 : vector<8xf32> to vector<1x8xf32>
    %116 = tpu.reciprocal %115 {approx = true} : vector<1x8xf32> -> vector<1x8xf32>
    %117 = vector.broadcast %116 : vector<1x8xf32> to vector<8x8xf32>
    %118 = arith.mulf %113, %117 : vector<8x8xf32>
    %cst_39 = arith.constant dense<0xFF800000> : vector<8xf32>
    %119 = vector.multi_reduction <maximumf>, %118, %cst_39 [1] : vector<8x8xf32> to vector<8xf32>
    %120 = vector.shape_cast %119 : vector<8xf32> to vector<8x1xf32>
    %121 = vector.broadcast %120 : vector<8x1xf32> to vector<8x8xf32>
    %122 = arith.subf %118, %121 : vector<8x8xf32>
    %123 = math.exp %122 : vector<8x8xf32>
    %cst_40 = arith.constant dense<0.000000e+00> : vector<8xf32>
    %124 = vector.multi_reduction <add>, %123, %cst_40 [1] : vector<8x8xf32> to vector<8xf32>
    %125 = vector.shape_cast %124 : vector<8xf32> to vector<8x1xf32>
    %126 = tpu.reciprocal %125 {approx = true} : vector<8x1xf32> -> vector<8x1xf32>
    %127 = vector.broadcast %126 : vector<8x1xf32> to vector<8x8xf32>
    %128 = arith.mulf %123, %127 : vector<8x8xf32>
    %129 = arith.truncf %128 : vector<8x8xf32> to vector<8x8xbf16>
    %cst_41 = arith.constant dense<0.000000e+00> : vector<8x16xf32>
    %130 = tpu.matmul %129, %107, %cst_41 {dimension_numbers = #tpu.dot_dimension_numbers<[1], [0], [0], [1], [0, 0, 1, 1], [], []>} : vector<8x8xbf16>, vector<8x16xbf16>, vector<8x16xf32> -> vector<8x16xf32>
    %131 = arith.truncf %130 : vector<8x16xf32> to vector<8x16xbf16>
    %c3 = arith.constant 3 : index
    %c0_42 = arith.constant 0 : index
    %c0_43 = arith.constant 0 : index
    %132 = vector.load %arg4[%c3, %c0_42, %c0_43] : memref<4x16x32xbf16, #tpu.memory_space<vmem>>, vector<1x16x32xbf16>
    %133 = vector.shape_cast %132 : vector<1x16x32xbf16> to vector<16x32xbf16>
    %cst_44 = arith.constant dense<0.000000e+00> : vector<8x32xf32>
    %134 = tpu.matmul %131, %133, %cst_44 {dimension_numbers = #tpu.dot_dimension_numbers<[1], [0], [0], [1], [0, 0, 1, 1], [], []>} : vector<8x16xbf16>, vector<16x32xbf16>, vector<8x32xf32> -> vector<8x32xf32>
    %135 = arith.addf %104, %134 : vector<8x32xf32>
    %c0_45 = arith.constant 0 : index
    %c0_46 = arith.constant 0 : index
    %136 = vector.load %arg5[%c0_45, %c0_46] : memref<1x32xf32, #tpu.memory_space<vmem>>, vector<1x32xf32>
    %137 = vector.broadcast %136 : vector<1x32xf32> to vector<8x32xf32>
    %138 = arith.addf %135, %137 : vector<8x32xf32>
    %c0_47 = arith.constant 0 : index
    %c0_48 = arith.constant 0 : index
    %c0_49 = arith.constant 0 : index
    %139 = vector.load %arg6[%c0_47, %c0_48, %c0_49] : memref<1x8x32xf32, #tpu.memory_space<vmem>>, vector<1x8x32xf32>
    %140 = vector.shape_cast %139 : vector<1x8x32xf32> to vector<8x32xf32>
    %141 = vector.shape_cast %138 : vector<8x32xf32> to vector<1x8x32xf32>
    tpu.vector_store %arg6[%c0_47, %c0_48, %c0_49], %141 {strides = array<i32>} : memref<1x8x32xf32, #tpu.memory_space<vmem>>, vector<1x8x32xf32>,
    return
  }
  func.func @transform_0(%arg0: i32) -> (i32, i32, i32) {
    %c0_i32 = arith.constant 0 : i32
    %c0_i32_0 = arith.constant 0 : i32
    %c0_i32_1 = arith.constant 0 : i32
    return %arg0, %c0_i32, %c0_i32_0 : i32, i32, i32
  }
  func.func @transform_1(%arg0: i32) -> (i32, i32) {
    %c0_i32 = arith.constant 0 : i32
    %c0_i32_0 = arith.constant 0 : i32
    %c0_i32_1 = arith.constant 0 : i32
    return %c0_i32, %c0_i32_0 : i32, i32
  }
  func.func @transform_2(%arg0: i32) -> (i32, i32) {
    %c0_i32 = arith.constant 0 : i32
    %c0_i32_0 = arith.constant 0 : i32
    %c0_i32_1 = arith.constant 0 : i32
    return %c0_i32, %c0_i32_0 : i32, i32
  }
  func.func @transform_3(%arg0: i32) -> (i32, i32, i32) {
    %c0_i32 = arith.constant 0 : i32
    %c0_i32_0 = arith.constant 0 : i32
    %c0_i32_1 = arith.constant 0 : i32
    %c0_i32_2 = arith.constant 0 : i32
    return %c0_i32, %c0_i32_0, %c0_i32_1 : i32, i32, i32
  }
  func.func @transform_4(%arg0: i32) -> (i32, i32) {
    %c0_i32 = arith.constant 0 : i32
    %c0_i32_0 = arith.constant 0 : i32
    %c0_i32_1 = arith.constant 0 : i32
    return %c0_i32, %c0_i32_0 : i32, i32
  }
  func.func @transform_5(%arg0: i32) -> (i32, i32, i32) {
    %c0_i32 = arith.constant 0 : i32
    %c0_i32_0 = arith.constant 0 : i32
    %c0_i32_1 = arith.constant 0 : i32
    return %arg0, %c0_i32, %c0_i32_0 : i32, i32, i32
  }
}

</mosaic_0001>

<bundles_post_ra>
// kernel: tpu_custom_call.1
= control target key start
LH: loop header
LB: loop body
LE: loop exit
PB: predicated region body
PF: predicated region fallthrough
CT: control target
= control target key end

     0   :  { %10 = vsyncpa [#allocation3], 0  ;;  %s1940_s0 = inlined_call_operand.hbm [shape: f32[2,8,32], index: 0, kind: input, shape index: {}]   ;;  %s1941_s1 = inlined_call_operand.hbm [shape: bf16[32,192], index: 1, kind: input, shape index: {}]   ;;  %s1942_s2 = inlined_call_operand.vmem [shape: f32[1,192], index: 2, kind: input, shape index: {}]   ;;  %s1943_s3 = inlined_call_operand.hbm [shape: bf16[4,16,32], index: 3, kind: input, shape index: {}]   ;;  %s1944_s4 = inlined_call_operand.vmem [shape: f32[1,32], index: 4, kind: input, shape index: {}]   ;;  %s1945_s5 = inlined_call_operand.hbm [shape: f32[2,8,32], index: 5, kind: output, shape index: {}]  }
   0x1   :  { %12 = vsyncpa [#allocation3 + $0x1], 0 }
   0x2   :  { %13 = vsyncpa [#allocation6], 0 }
   0x3   :  { %14 = vsyncpa [#allocation4], 0 }
   0x4   :  { %16 = vsyncpa [#allocation4 + $0x1], 0  ;;  %s1654_s18 = smov 0   ;;  %s1656_s19 = smov 0  }
   0x5   :  { %s1658_s20 = smov 0   ;;  %s1660_s21 = smov 0  }
   0x6 LB: > { %s1675_s22 = sadd.s32 4294967295, %s1604_s21   ;;  %s1199_s23 = sadd.s32 4294967294, %s1604_s21   ;;  %s1604_s21 = sphi %s1660_s21, %s1967_s21   ;;  %s1600_s20 = sphi %s1658_s20, %s1966_s20   ;;  %s1596_s19 = sphi %s1656_s19, %s1965_s19   ;;  %s1592_s18 = sphi %s1654_s18, %s1964_s18  }
   0x7   : > { %p42_p0 = scmp.ne.s32.totalorder %s1596_s19, %s1592_s18  ;;  %p1946_p1 = scmp.eq.s32.totalorder %s1675_s22, 0 }
   0x8   : > { %p156_p3 = scmp.eq.s32.totalorder %s1199_s23, 1  ;;  %p1200_p5 = scmp.ge.s32.totalorder %s1604_s21, 1 }
   0x9   : > { %p1684_p4 = por %p1946_p1, %p42_p0  ;;  %p163_p7 = scmp.lt.s32.totalorder %s1604_s21, 3 }
   0xa   : > { %p1689_p6 = por %p156_p3, %p42_p0  ;;  %s1606_s27 = smov [#allocation5]  }
   0xb   : > { %s1950_s24 = scalar_select %p1684_p4, 1, 0 }
   0xc   : > { %s1951_s25 = scalar_select %p1689_p6, 1, 0 }
   0xd   : > { %p1694_p8 = pnand %p1200_p5, %p163_p7  ;;  %s175_s28 = sshll.u32 %s1606_s27, 4  ;;  %s176_s28 = int_to_ptr.vmem [resolvable:$true] %s175_s28 }
   0xe   : > { %s1607_s30 = smov [#allocation7]   ;;  %s1467_s7 = scalar_lea.vmem %s176_s28, 512 }
   0xf   : > { %s1952_s26 = scalar_select %p1694_p8, 1, 0 }
  0x10   : > { %p1345_p9 = pneg %p1694_p8  ;;  %s191_s6 = sshll.u32 %s1607_s30, 4  ;;  %s192_s6 = int_to_ptr.vmem [resolvable:$true] %s191_s6 }
  0x11   : > { %p1468_p13 = scmp.ne.s32.totalorder %s176_s28, %s1467_s7  ;;  %p1475_p5 = scmp.lt.s32.totalorder %s176_s28, %s176_s28 }
  0x12   : > { %p1703_p11 = pnand %p1345_p9, %p1946_p1  ;;  %p1476_p7 = scmp.lt.s32.totalorder %s1467_s7, %s1467_s7 }
  0x14   : > { %p1458_p12 = pneg %p1703_p11  ;;  %p1477_p10 = por %p1476_p7, %p1475_p5 }
  0x16   : > { %p1470_p0 = pnand %p1468_p13, %p1458_p12 }
  0x18   : > { %p1471_p3 = pneg %p1470_p0 }
  0x1a   : > { %p1478_p9 = pnand %p1477_p10, %p1471_p3 }
  0x1c   : > { %1481 = shalt.err (!%p1478_p9)
}
  0x1d   : > { %s1608_s8 = smov 128   ;;  %s1609_s9 = smov 8  }
  0x1e   : > { %1348 = dma.hbm_to_vmem [thread:$0]  (!%p1703_p11), %s1941_s1, 512, %s176_s28, [#allocation6], %s1608_s8, %s1608_s8, %s1609_s9  }
  0x1f   : > { %s1493_s12 = scalar_lea.vmem %s192_s6, 512  ;;  %p1501_p2 = scmp.lt.s32.totalorder %s192_s6, %s192_s6 }
  0x20   : > { %p1494_p1 = scmp.ne.s32.totalorder %s192_s6, %s1493_s12  ;;  %p1502_p6 = scmp.lt.s32.totalorder %s1493_s12, %s1493_s12 }
  0x22   : > { %p1496_p13 = pnand %p1494_p1, %p1458_p12  ;;  %p1503_p5 = por %p1502_p6, %p1501_p2 }
  0x24   : > { %p1497_p0 = pneg %p1496_p13 }
  0x26   : > { %p1504_p10 = pnand %p1503_p5, %p1497_p0 }
  0x28   : > { %1507 = shalt.err (!%p1504_p10)
}
  0x29   : > { %s1610_s13 = smov 64   ;;  %s1611_s14 = smov 4  }
  0x2a   : > { %1351 = dma.hbm_to_vmem [thread:$0]  (!%p1703_p11), %s1943_s3, 512, %s192_s6, [#allocation6], %s1610_s13, %s1610_s13, %s1611_s14  }
  0x2b   : > { %s1726_s17 = sadd.s32 1, %s1604_s21   ;;  %s29_s27 = sadd.s32 1, %s1600_s20 }
  0x2c   : > { %s26_s23 = ssub.s32 %s1604_s21, %s1726_s17  ;;  %p36_p2 = scmp.ne.s32.totalorder %s1600_s20, %s1596_s19 }
  0x2d   : > { %p27_p1 = scmp.eq.s32.totalorder %s26_s23, 0  ;;  %p37_p6 = scmp.eq.s32.totalorder %s1604_s21, 0 }
  0x2e   : > { %p1954_p3 = scmp.eq.s32.totalorder %s1675_s22, 1  ;;  %p1362_p9 = scmp.lt.s32.totalorder %s1604_s21, 2 }
  0x2f   : > { %s1735_s28 = scalar_select %p27_p1, %s1600_s20, %s29_s27  }
  0x30   : > { %p38_p12 = por %p37_p6, %p36_p2  ;;  %p1739_p7 = por %p1954_p3, %p36_p2 }
  0x31   : > { %s208_s29 = sand.u32 1, %s1600_s20   ;;  %s1205_s6 = sshll.u32 %s1604_s21, 7 }
  0x32   : > { %s1955_s30 = scalar_select %p1739_p7, 1, 0 }
  0x33   : > { %s1204_s7 = sshll.u32 %s208_s29, 3  ;;  %s1749_s10 = scalar_lea.hbm %s1940_s0, %s1205_s6 }
  0x34   : > { %s212_s11 = scalar_lea.vmem [#allocation2], %s1204_s7  ;;  %p1751_p11 = pnand %p1362_p9, %p38_p12 }
  0x35   : > { %s219_s12 = sshll.u32 %s212_s11, 4  ;;  %s209_s14 = scalar_lea.sflag [#allocation3], %s208_s29  ;;  %s220_s12 = int_to_ptr.vmem [resolvable:$true] %s219_s12 }
  0x36   : > { %s1508_s15 = scalar_lea.hbm %s1749_s10, 128  ;;  %p1510_p0 = pneg %p1751_p11 }
  0x37   : > { %p1509_p13 = scmp.ne.s32.totalorder %s1749_s10, %s1508_s15  ;;  %s1513_s27 = scalar_lea.hbm %s1940_s0, 256 }
  0x38   : > { %p1514_p1 = scmp.lt.s32.totalorder %s1749_s10, %s1940_s0  ;;  %p1515_p2 = scmp.lt.s32.totalorder %s1513_s27, %s1508_s15 }
  0x39   : > { %p1511_p5 = pnand %p1510_p0, %p1509_p13 }
  0x3a   : > { %p1516_p6 = por %p1515_p2, %p1514_p1 }
  0x3b   : > { %p1512_p10 = pneg %p1511_p5 }
  0x3d   : > { %p1517_p12 = pnand %p1516_p6, %p1512_p10 }
  0x3f   : > { %1520 = shalt.err (!%p1517_p12)
}
  0x40   : > { %s1521_s8 = scalar_lea.vmem %s220_s12, 128  ;;  %s1612_s29 = smov [#allocation2]  }
  0x41   : > { %p1522_p3 = scmp.ne.s32.totalorder %s220_s12, %s1521_s8  ;;  %s1526_s9 = sshll.u32 %s1612_s29, 4  ;;  %s1527_s9 = int_to_ptr.vmem [resolvable:$false] %s1526_s9 }
  0x42   : > { %s1528_s11 = scalar_lea.vmem %s1527_s9, 256  ;;  %p1529_p13 = scmp.lt.s32.totalorder %s220_s12, %s1527_s9 }
  0x43   : > { %p1524_p9 = pnand %p1522_p3, %p1510_p0  ;;  %p1530_p5 = scmp.lt.s32.totalorder %s1528_s11, %s1521_s8 }
  0x45   : > { %p1525_p7 = pneg %p1524_p9  ;;  %p1531_p4 = por %p1530_p5, %p1529_p13 }
  0x47   : > { %p1532_p8 = pnand %p1531_p4, %p1525_p7 }
  0x49   : > { %1535 = shalt.err (!%p1532_p8)
}
  0x4a   : > { %1355 = dma.hbm_to_vmem [thread:$0]  (!%p1751_p11), %s1749_s10, 128, %s220_s12, %s209_s14  }
  0x4b   : > { %p1957_p10 = scmp.ne.s32.totalorder %s1952_s26, 0 }
  0x4c   : > { %s1772_s15 = sand.u32 (!%p1957_p10), 1, %s1596_s19   ;;  %p1958_p4 = scmp.ne.s32.totalorder (!%p1957_p10), %s1950_s24, 0 }
  0x4d   : > { %228 = sbr.rel (%p1957_p10) target bundleno = 2743 (0xab7), region = 40  ;;  %s1207_s16 = sshll.u32 (!%p1957_p10), %s1772_s15, 3 }
  0x4e   : > { %s231_s23 = scalar_lea.sflag (!%p1957_p10), [#allocation3], %s1772_s15  ;;  %s234_s27 = scalar_lea.vmem (!%p1957_p10), [#allocation2], %s1207_s16 }
  0x52   : > { %1579 = dma.done.wait (%p1958_p4), %s231_s23, 128  }
  0x53   : > { %1581 = vsyncadd (%p1958_p4), %s231_s23, 4294967168  ;;  %p1959_p8 = scmp.eq.s32.totalorder %s1675_s22, 0 }
  0x55   : > { %1583 = dma.done.wait (%p1959_p8), [#allocation6], 1024   ;;  %p1960_p7 = pmov %p1959_p8 }
  0x56   : > { %v1613_v0 = vmov 0   ;;  %v1414_v1 = vld [vmem:[#allocation5 + $0x14] ss:$8 sps:$4 sm:$0xff]   ;;  %v1416_v2 = vld [vmem:[#allocation5 + $0x10] ss:$8 sps:$4 sm:$0xff]   ;;  %vm308_vm0 = vcmask 261120   ;;  %v278_v8 = vlaneseq }
  0x57   : > { %1585 = vsyncadd (%p1960_p7), [#allocation6], 4294966272  ;;  %344 = vmatprep.mubr.bf16.mxu0 %v1613_v0  ;;  %324 = vmatprep.subr.bf16.mxu0 %v1414_v1  ;;  %v1417_v3 = vld [vmem:[#allocation5 + $0x4] ss:$8 sps:$4 sm:$0xff]   ;;  %v1419_v4 = vld [vmem:[#allocation5] ss:$8 sps:$4 sm:$0xff]  }
  0x58   : > { %325 = vmatpush1.bf16.msra.mxu0 %v1416_v2  ;;  %v270_v5 = vld [vmem:[%s234_s27] sm:$0xff]  ;;  %v1614_v7 = vmov 0.0   ;;  %v279_v9 = vshrl.u32 %v278_v8, 7  ;;  %vm1615_vm1 = vmmov 0   ;;  %vm442_vm2 = vcmask 1043456   ;;  %s1616_s10 = smov 112  }
  0x59   : > { %326 = vmatprep.subr.bf16.mxu0 %v1417_v3  ;;  %v271_v6 = vpack.c.bf16 %v270_v5, %v270_v5  ;;  %1261 = vmatprep.subr.bf16.mxu1 %v1614_v7  ;;  %v276_v11 = vld [vmem:[%s1942_s2] sm:$0x3]  ;;  %s1617_s12 = smov 64   ;;  %s1618_s13 = smov 48   ;;  %vm360_vm3 = vcmask 130048   ;;  %vm407_vm4 = vcmask 64512  }
  0x5a   : > { %v280_v10 = vsub.s32 0, %v279_v9  ;;  %v284_v12 = vsub.s32 1, %v279_v9  ;;  %1263 = vmatprep.mubr.msk.bf16.mxu1 %vm1615_vm1, %v1614_v7  ;;  %s1619_s14 = smov 32   ;;  %s1620_s6 = smov 96  }
  0x5b   : > { %s1621_s7 = smov 80   ;;  %s1622_s8 = smov 16  }
  0x5c   : > { %327 = vmatpush1.bf16.msra.mxu0 %v1419_v4  ;;  %v281_v13 = vrot.slane %v276_v11, %v280_v10  ;;  %v285_v14 = vrot.slane %v276_v11, %v284_v12  ;;  %s1234_s11 = sshll.u32 %s1675_s22, 7  ;;  %s268_s23 = scalar_lea.vmem [#allocation8], %s1207_s16 }
  0x5d   : > { %1267 = vmatprep.subr.bf16.mxu0 %v1614_v7  ;;  %s1110_s27 = sshll.u32 %s268_s23, 4  ;;  %s1097_s22 = scalar_lea.sflag [#allocation4], %s1772_s15  ;;  %s1898_s27 = int_to_ptr.vmem [resolvable:$true] %s1110_s27 }
  0x5e   : > { %s1536_s16 = scalar_lea.vmem %s1898_s27, 128  ;;  %p1961_p0 = scmp.ne.s32.totalorder %s1955_s30, 0 }
  0x5f   : > { %1215 = vmatmul.mubr.msk.bf16.vlgmr.msra.gmra.mxu0 %vm308_vm0, %v271_v6  ;;  %p1537_p11 = scmp.ne.s32.totalorder %s1898_s27, %s1536_s16 }
  0x60   : > { %1269 = vmatprep.mubr.msk.bf16.mxu0 %vm1615_vm1, %v1614_v7 }
  0x61   : > { %p1538_p1 = pnand %p1537_p11, %p1961_p0 }
  0x63   : > { %p1539_p2 = pneg %p1538_p1 }
 0x11f   : > { %v346_v15 = vpop.f32.mrf.mxu0 }
 0x120   : > { %v347_v16 = vadd.f32 %v346_v15, %v281_v13 }
 0x121   : > { %v348_v17 = vpop.f32.mrf.mxu0 }
 0x122   : > { %v353_v18 = vmax.f32 %v347_v16, 0.0  ;;  %v349_v19 = vadd.f32 %v348_v17, %v285_v14 }
 0x123   : > { %v350_v20 = vpop.f32.mrf.mxu0 }
 0x124   : > { %v1796_v21 = vpack.c.bf16 %v353_v18, %v353_v18  ;;  %v354_v22 = vmax.f32 %v349_v19, 0.0 }
 0x125   : > { %v351_v23 = vpop.f32.mrf.mxu0 }
 0x126   : > { %v1798_v24 = vpack.c.bf16 %v354_v22, %v354_v22  ;;  %489 = vrot.lane.b32.xlu1 %v1796_v21, %s1616_s10  ;;  %358 = vrot.lane.b32.xlu0 %v1796_v21, %s1617_s12  ;;  %s1623_s12 = smov [#allocation8]  }
 0x128   : > { %v444_v25 = vsel %vm442_vm2, %v1798_v24, 0 }
 0x129   : > { %1268 = vmatpush3.bf16.msra.mxu0 %v444_v25 }
 0x12a   : > { %491 = vrot.lane.b32.xlu0 %v1796_v21, %s1618_s13  ;;  %1279 = vmatprep.subr.bf16.mxu0 %v1614_v7  ;;  %s1540_s13 = sshll.u32 %s1623_s12, 4  ;;  %s1541_s13 = int_to_ptr.vmem [resolvable:$false] %s1540_s13 }
 0x12b   : > { %p1543_p6 = scmp.lt.s32.totalorder %s1898_s27, %s1541_s13 }
 0x198   : > { %v359_v26 = vpop.permute.xlu0 %358  ;;  %v490_v30 = vpop.permute.xlu1 %489 }
 0x199   : > { %v365_v27 = vsel %vm360_vm3, %v359_v26, 0 }
 0x19a   : > { %1262 = vmatpush3.bf16.xpose.msra.mxu1 %v365_v27 }
 0x19b   : > { %1273 = vmatprep.subr.bf16.mxu1 %v1614_v7 }
 0x19c   : > { %v492_v28 = vpop.permute.xlu0 %491 }
 0x19d   : > { %v497_v29 = vsel %vm360_vm3, %v492_v28, 0 }
 0x1a1   : > { %1264 = vmatmul.mubr.msk.bf16.vlgmr.msra.gmra.mxu1 %vm360_vm3, %v1796_v21 }
 0x1a2   : > { %1274 = vmatpush3.bf16.xpose.msra.mxu1 %v497_v29  ;;  %1275 = vmatprep.mubr.msk.bf16.mxu1 %vm1615_vm1, %v1614_v7 }
 0x1a3   : > { %1285 = vmatprep.subr.bf16.mxu1 %v1614_v7 }
 0x1a9   : > { %1276 = vmatmul.mubr.msk.bf16.vlgmr.msra.gmra.mxu1 %vm360_vm3, %v490_v30 }
 0x1aa   : > { %1287 = vmatprep.mubr.msk.bf16.mxu1 %vm1615_vm1, %v1614_v7 }
 0x261   : > { %v401_v31 = vpop.f32.mrf.mxu1 }
 0x262   : > { %v408_v32 = vsel %vm407_vm4, %v401_v31, -inf }
 0x263   : > { %v409_v33 = vrot.slane %v408_v32, 4  ;;  %v1265_v34 = vpop.f32.mrf.mxu1 }
 0x265   : > { %v410_v35 = vmax.f32 %v408_v32, %v409_v33  ;;  %v404_v36 = vpop.f32.mrf.mxu1 }
 0x267   : > { %v411_v37 = vrot.slane %v410_v35, 2  ;;  %v1266_v38 = vpop.f32.mrf.mxu1 }
 0x268   : > { %v1420_v38 = vld [vmem:[#allocation7] sm:$0xff]  }
 0x269   : > { %v412_v39 = vmax.f32 %v410_v35, %v411_v37  ;;  %v533_v40 = vpop.f32.mrf.mxu1 }
 0x26a   : > { %v539_v41 = vsel %vm407_vm4, %v533_v40, -inf }
 0x26b   : > { %v413_v42 = vrot.slane %v412_v39, 1  ;;  %v540_v43 = vrot.slane %v539_v41, 4  ;;  %v1277_v44 = vpop.f32.mrf.mxu1 }
 0x26d   : > { %v414_v45 = vmax.f32 %v412_v39, %v413_v42  ;;  %v541_v46 = vmax.f32 %v539_v41, %v540_v43  ;;  %v536_v47 = vpop.f32.mrf.mxu1  ;;  %v1421_v39 = vld [vmem:[#allocation7 + $0x8] sm:$0xff]  }
 0x26e   : > { %1286 = vmatpush3.bf16.msra.mxu1 %v1421_v39 }
 0x26f   : > { %v415_v48 = vsub.f32 %v401_v31, %v414_v45  ;;  %v542_v49 = vrot.slane %v541_v46, 2  ;;  %v1278_v50 = vpop.f32.mrf.mxu1  ;;  %1297 = vmatprep.subr.bf16.mxu1 %v1614_v7 }
 0x271   : > { %v416_v51 = vmul.f32 1.442695, %v415_v48  ;;  %v543_v52 = vmax.f32 %v541_v46, %v542_v49 }
 0x273   : > { %1424 = vpow2.f32 %v416_v51  ;;  %v544_v53 = vrot.slane %v543_v52, 1 }
 0x275   : > { %v545_v54 = vmax.f32 %v543_v52, %v544_v53 }
 0x277   : > { %v546_v55 = vsub.f32 %v533_v40, %v545_v54 }
 0x279   : > { %v547_v56 = vmul.f32 1.442695, %v546_v55 }
 0x27b   : > { %1426 = vpow2.f32 %v547_v56 }
 0x280   : > { %v1425_v57 = vpop.eup %1424 }
 0x281   : > { %v418_v58 = vsel %vm407_vm4, %v1425_v57, 0.0 }
 0x282   : > { %v419_v59 = vrot.slane %v418_v58, 4 }
 0x284   : > { %v420_v60 = vadd.f32 %v419_v59, %v418_v58 }
 0x286   : > { %v421_v61 = vrot.slane %v420_v60, 2 }
 0x288   : > { %v1427_v62 = vpop.eup %1426  ;;  %v422_v63 = vadd.f32 %v421_v61, %v420_v60 }
 0x289   : > { %v549_v0 = vsel %vm407_vm4, %v1427_v62, 0.0 }
 0x28a   : > { %v550_v1 = vrot.slane %v549_v0, 4  ;;  %v423_v2 = vrot.slane %v422_v63, 1 }
 0x28c   : > { %v551_v3 = vadd.f32 %v550_v1, %v549_v0  ;;  %v424_v4 = vadd.f32 %v423_v2, %v422_v63 }
 0x28e   : > { %v552_v5 = vrot.slane %v551_v3, 2  ;;  %1428 = vrcp.f32 %v424_v4 }
 0x290   : > { %v553_v6 = vadd.f32 %v552_v5, %v551_v3 }
 0x292   : > { %v554_v8 = vrot.slane %v553_v6, 1 }
 0x294   : > { %v555_v9 = vadd.f32 %v554_v8, %v553_v6 }
 0x296   : > { %1430 = vrcp.f32 %v555_v9 }
 0x29b   : > { %v1429_v10 = vpop.eup %1428 }
 0x29c   : > { %v426_v11 = vmul.f32 %v1429_v10, %v1425_v57 }
 0x29e   : > { %v427_v12 = vsel %vm407_vm4, %v426_v11, -inf }
 0x29f   : > { %428 = vmax.xlane.f32.xlu1 %v427_v12 }
 0x2a3   : > { %v1431_v13 = vpop.eup %1430 }
 0x2a4   : > { %v557_v14 = vmul.f32 %v1431_v13, %v1427_v62 }
 0x2a6   : > { %v558_v15 = vsel %vm407_vm4, %v557_v14, -inf }
 0x2a7   : > { %559 = vmax.xlane.f32.xlu0 %v558_v15 }
 0x328   : > { %v429_v16 = vpop.xlane.xlu1 %428 }
 0x329   : > { %v430_v17 = vsub.f32 %v426_v11, %v429_v16 }
 0x32b   : > { %v431_v18 = vmul.f32 1.442695, %v430_v17 }
 0x32d   : > { %1432 = vpow2.f32 %v431_v18 }
 0x330   : > { %v560_v19 = vpop.xlane.xlu0 %559 }
 0x331   : > { %v561_v20 = vsub.f32 %v557_v14, %v560_v19 }
 0x333   : > { %v562_v22 = vmul.f32 1.442695, %v561_v20 }
 0x335   : > { %1434 = vpow2.f32 %v562_v22 }
 0x33a   : > { %v1433_v23 = vpop.eup %1432 }
 0x33b   : > { %v433_v25 = vsel %vm407_vm4, %v1433_v23, 0.0 }
 0x33c   : > { %434 = vadd.xlane.f32.xlu0 %v433_v25 }
 0x342   : > { %v1435_v26 = vpop.eup %1434 }
 0x343   : > { %v564_v27 = vsel %vm407_vm4, %v1435_v26, 0.0 }
 0x344   : > { %565 = vadd.xlane.f32.xlu1 %v564_v27 }
 0x352   : > { %571 = vrot.lane.b32.xlu0 %v1798_v24, %s1616_s10  ;;  %s1896_s10 = scalar_lea.hbm %s1945_s5, %s1234_s11 }
 0x355   : > { %723 = vrot.lane.b32.xlu1 %v1796_v21, %s1619_s14  ;;  %s1542_s14 = scalar_lea.vmem %s1541_s13, 256 }
 0x356   : > { %p1544_p12 = scmp.lt.s32.totalorder %s1542_s14, %s1536_s16 }
 0x358   : > { %p1545_p3 = por %p1544_p12, %p1543_p6 }
 0x359   : > { %721 = vrot.lane.b32.xlu1 %v1796_v21, %s1620_s6 }
 0x35a   : > { %p1546_p9 = pnand %p1545_p3, %p1539_p2 }
 0x3c5   : > { %v435_v28 = vpop.xlane.xlu0 %434 }
 0x3c6   : > { %1436 = vrcp.f32 %v435_v28 }
 0x3c9   : > { %v572_v32 = vpop.permute.xlu0 %571 }
 0x3ca   : > { %v577_v34 = vsel %vm442_vm2, %v572_v32, 0 }
 0x3cd   : > { %v566_v29 = vpop.xlane.xlu1 %565 }
 0x3ce   : > { %1438 = vrcp.f32 %v566_v29 }
 0x3d1   : > { %v724_v45 = vpop.permute.xlu1 %723 }
 0x3d2   : > { %v729_v49 = vsel %vm360_vm3, %v724_v45, 0 }
 0x3d3   : > { %v1437_v30 = vpop.eup %1436 }
 0x3d4   : > { %v437_v31 = vmul.f32 %v1437_v30, %v1433_v23 }
 0x3d5   : > { %v722_v52 = vpop.permute.xlu1 %721 }
 0x3d6   : > { %v438_v33 = vpack.c.bf16 %v437_v31, %v437_v31 }
 0x3d8   : > { %1270 = vmatmul.mubr.msk.bf16.vlgmr.msra.gmra.mxu0 %vm407_vm4, %v438_v33 }
 0x3d9   : > { %1280 = vmatpush3.bf16.msra.mxu0 %v577_v34  ;;  %1281 = vmatprep.mubr.msk.bf16.mxu0 %vm1615_vm1, %v1614_v7 }
 0x3da   : > { %1291 = vmatprep.subr.bf16.mxu0 %v1614_v7 }
 0x3db   : > { %v1439_v35 = vpop.eup %1438 }
 0x3dc   : > { %v568_v36 = vmul.f32 %v1439_v35, %v1435_v26 }
 0x3de   : > { %v569_v37 = vpack.c.bf16 %v568_v36, %v568_v36 }
 0x3e0   : > { %1282 = vmatmul.mubr.msk.bf16.vlgmr.msra.gmra.mxu0 %vm407_vm4, %v569_v37 }
 0x3e1   : > { %1293 = vmatprep.mubr.msk.bf16.mxu0 %vm1615_vm1, %v1614_v7  ;;  %1292 = vmatpush3.bf16.msra.mxu0 %v1420_v38 }
 0x3e2   : > { %1303 = vmatprep.subr.bf16.mxu0 %v1614_v7 }
 0x498   : > { %v480_v40 = vpop.f32.mrf.mxu0 }
 0x499   : > { %v486_v41 = vpack.c.bf16 %v480_v40, %v480_v40 }
 0x49a   : > { %v1271_v42 = vpop.f32.mrf.mxu0 }
 0x49b   : > { %1294 = vmatmul.mubr.msk.bf16.vlgmr.msra.gmra.mxu0 %vm360_vm3, %v486_v41 }
 0x49c   : > { %v483_v43 = vpop.f32.mrf.mxu0  ;;  %1305 = vmatprep.mubr.msk.bf16.mxu0 %vm1615_vm1, %v1614_v7 }
 0x49e   : > { %v1272_v44 = vpop.f32.mrf.mxu0 }
 0x4a0   : > { %v613_v46 = vpop.f32.mrf.mxu0 }
 0x4a1   : > { %v619_v47 = vpack.c.bf16 %v613_v46, %v613_v46 }
 0x4a2   : > { %v1283_v48 = vpop.f32.mrf.mxu0 }
 0x4a3   : > { %1288 = vmatmul.mubr.msk.bf16.vlgmr.msra.gmra.mxu1 %vm360_vm3, %v619_v47 }
 0x4a4   : > { %1298 = vmatpush3.bf16.xpose.msra.mxu1 %v729_v49  ;;  %v616_v50 = vpop.f32.mrf.mxu0  ;;  %1299 = vmatprep.mubr.msk.bf16.mxu1 %vm1615_vm1, %v1614_v7 }
 0x4a5   : > { %1309 = vmatprep.subr.bf16.mxu1 %v1614_v7 }
 0x4a6   : > { %v1284_v51 = vpop.f32.mrf.mxu0 }
 0x4ab   : > { %1300 = vmatmul.mubr.msk.bf16.vlgmr.msra.gmra.mxu1 %vm360_vm3, %v722_v52 }
 0x4ac   : > { %1311 = vmatprep.mubr.msk.bf16.mxu1 %vm1615_vm1, %v1614_v7 }
 0x55b   : > { %v715_v53 = vpop.f32.mrf.mxu0 }
 0x55d   : > { %v1295_v54 = vpop.f32.mrf.mxu0 }
 0x55f   : > { %v718_v55 = vpop.f32.mrf.mxu0 }
 0x561   : > { %v1296_v56 = vpop.f32.mrf.mxu0 }
 0x563   : > { %v666_v57 = vpop.f32.mrf.mxu1 }
 0x564   : > { %v1852_v58 = vadd.f32 %v715_v53, %v666_v57 }
 0x565   : > { %v1289_v59 = vpop.f32.mrf.mxu1 }
 0x567   : > { %v669_v60 = vpop.f32.mrf.mxu1 }
 0x569   : > { %v1290_v61 = vpop.f32.mrf.mxu1 }
 0x56b   : > { %v765_v62 = vpop.f32.mrf.mxu1 }
 0x56c   : > { %v771_v63 = vsel %vm407_vm4, %v765_v62, -inf }
 0x56d   : > { %v772_v0 = vrot.slane %v771_v63, 4  ;;  %v1301_v1 = vpop.f32.mrf.mxu1 }
 0x56f   : > { %v773_v2 = vmax.f32 %v771_v63, %v772_v0  ;;  %v768_v3 = vpop.f32.mrf.mxu1 }
 0x571   : > { %v774_v4 = vrot.slane %v773_v2, 2  ;;  %v1302_v5 = vpop.f32.mrf.mxu1 }
 0x573   : > { %v775_v6 = vmax.f32 %v773_v2, %v774_v4 }
 0x575   : > { %v776_v8 = vrot.slane %v775_v6, 1 }
 0x577   : > { %v777_v9 = vmax.f32 %v775_v6, %v776_v8 }
 0x579   : > { %v778_v10 = vsub.f32 %v765_v62, %v777_v9 }
 0x57b   : > { %v779_v11 = vmul.f32 1.442695, %v778_v10 }
 0x57d   : > { %1440 = vpow2.f32 %v779_v11 }
 0x58a   : > { %v1441_v12 = vpop.eup %1440 }
 0x58b   : > { %v781_v13 = vsel %vm407_vm4, %v1441_v12, 0.0 }
 0x58c   : > { %v782_v14 = vrot.slane %v781_v13, 4 }
 0x58e   : > { %v783_v15 = vadd.f32 %v782_v14, %v781_v13 }
 0x590   : > { %v784_v16 = vrot.slane %v783_v15, 2 }
 0x592   : > { %v785_v17 = vadd.f32 %v784_v16, %v783_v15  ;;  %v1423_v15 = vld [vmem:[#allocation7 + $0x18] sm:$0xff]  }
 0x594   : > { %v786_v18 = vrot.slane %v785_v17, 1 }
 0x596   : > { %v787_v19 = vadd.f32 %v786_v18, %v785_v17 }
 0x598   : > { %1442 = vrcp.f32 %v787_v19 }
 0x5a5   : > { %v1443_v20 = vpop.eup %1442 }
 0x5a6   : > { %v789_v22 = vmul.f32 %v1443_v20, %v1441_v12 }
 0x5a8   : > { %v790_v23 = vsel %vm407_vm4, %v789_v22, -inf }
 0x5a9   : > { %791 = vmax.xlane.f32.xlu0 %v790_v23 }
 0x5bf   : > { %802 = vrot.lane.b32.xlu0 %v1798_v24, %s1620_s6 }
 0x5c3   : > { %904 = vrot.lane.b32.xlu0 %v1796_v21, %s1621_s7 }
 0x632   : > { %v792_v25 = vpop.xlane.xlu0 %791 }
 0x633   : > { %v793_v26 = vsub.f32 %v789_v22, %v792_v25 }
 0x635   : > { %v794_v27 = vmul.f32 1.442695, %v793_v26 }
 0x636   : > { %v803_v28 = vpop.permute.xlu0 %802 }
 0x637   : > { %1444 = vpow2.f32 %v794_v27  ;;  %v808_v29 = vsel %vm442_vm2, %v803_v28, 0  ;;  %v1232_v28 = vld [vmem:[%s1944_s4] ss:$0 sm:$0xff] }
 0x638   : > { %1304 = vmatpush3.bf16.msra.mxu0 %v808_v29 }
 0x639   : > { %1315 = vmatprep.subr.bf16.mxu0 %v1614_v7 }
 0x63a   : > { %v905_v38 = vpop.permute.xlu0 %904 }
 0x644   : > { %v1445_v30 = vpop.eup %1444 }
 0x645   : > { %v796_v31 = vsel %vm407_vm4, %v1445_v30, 0.0 }
 0x646   : > { %797 = vadd.xlane.f32.xlu1 %v796_v31 }
 0x657   : > { %906 = vrot.lane.b32.xlu1 %v1796_v21, %s1622_s8  ;;  %v1422_v21 = vld [vmem:[#allocation7 + $0x10] sm:$0xff]  }
 0x658   : > { %1310 = vmatpush3.bf16.msra.mxu1 %v1422_v21 }
 0x659   : > { %1321 = vmatprep.subr.bf16.mxu1 %v1614_v7 }
 0x6cf   : > { %v798_v32 = vpop.xlane.xlu1 %797 }
 0x6d0   : > { %1446 = vrcp.f32 %v798_v32 }
 0x6d3   : > { %v907_v35 = vpop.permute.xlu1 %906 }
 0x6d4   : > { %v912_v37 = vsel %vm360_vm3, %v907_v35, 0 }
 0x6dd   : > { %v1447_v33 = vpop.eup %1446 }
 0x6de   : > { %v800_v34 = vmul.f32 %v1447_v33, %v1445_v30 }
 0x6e0   : > { %v801_v36 = vpack.c.bf16 %v800_v34, %v800_v34 }
 0x6e2   : > { %1306 = vmatmul.mubr.msk.bf16.vlgmr.msra.gmra.mxu0 %vm407_vm4, %v801_v36 }
 0x6e3   : > { %1316 = vmatpush3.bf16.xpose.msra.mxu0 %v912_v37  ;;  %1317 = vmatprep.mubr.msk.bf16.mxu0 %vm1615_vm1, %v1614_v7 }
 0x6e4   : > { %1327 = vmatprep.subr.bf16.mxu0 %v1614_v7 }
 0x6ea   : > { %1318 = vmatmul.mubr.msk.bf16.vlgmr.msra.gmra.mxu0 %vm360_vm3, %v905_v38 }
 0x6eb   : > { %1329 = vmatprep.mubr.msk.bf16.mxu0 %vm1615_vm1, %v1614_v7  ;;  %1328 = vmatpush3.bf16.msra.mxu0 %v1423_v15 }
 0x7a2   : > { %v844_v39 = vpop.f32.mrf.mxu0 }
 0x7a3   : > { %v850_v40 = vpack.c.bf16 %v844_v39, %v844_v39 }
 0x7a4   : > { %v1307_v41 = vpop.f32.mrf.mxu0 }
 0x7a5   : > { %1312 = vmatmul.mubr.msk.bf16.vlgmr.msra.gmra.mxu1 %vm360_vm3, %v850_v40 }
 0x7a6   : > { %v847_v42 = vpop.f32.mrf.mxu0  ;;  %1323 = vmatprep.mubr.msk.bf16.mxu1 %vm1615_vm1, %v1614_v7 }
 0x7a8   : > { %v1308_v43 = vpop.f32.mrf.mxu0 }
 0x7aa   : > { %v948_v44 = vpop.f32.mrf.mxu0 }
 0x7ab   : > { %v954_v45 = vsel %vm407_vm4, %v948_v44, -inf }
 0x7ac   : > { %v955_v46 = vrot.slane %v954_v45, 4  ;;  %v1319_v47 = vpop.f32.mrf.mxu0 }
 0x7ae   : > { %v956_v48 = vmax.f32 %v954_v45, %v955_v46  ;;  %v951_v49 = vpop.f32.mrf.mxu0 }
 0x7b0   : > { %v957_v50 = vrot.slane %v956_v48, 2  ;;  %v1320_v51 = vpop.f32.mrf.mxu0 }
 0x7b2   : > { %v958_v52 = vmax.f32 %v956_v48, %v957_v50 }
 0x7b4   : > { %v959_v53 = vrot.slane %v958_v52, 1 }
 0x7b6   : > { %v960_v54 = vmax.f32 %v958_v52, %v959_v53 }
 0x7b8   : > { %v961_v55 = vsub.f32 %v948_v44, %v960_v54 }
 0x7ba   : > { %v962_v56 = vmul.f32 1.442695, %v961_v55 }
 0x7bc   : > { %1448 = vpow2.f32 %v962_v56 }
 0x7c9   : > { %v1449_v57 = vpop.eup %1448 }
 0x7ca   : > { %v964_v59 = vsel %vm407_vm4, %v1449_v57, 0.0 }
 0x7cb   : > { %v965_v7 = vrot.slane %v964_v59, 4 }
 0x7cd   : > { %v966_v60 = vadd.f32 %v965_v7, %v964_v59 }
 0x7cf   : > { %v967_v61 = vrot.slane %v966_v60, 2 }
 0x7d1   : > { %v968_v62 = vadd.f32 %v967_v61, %v966_v60 }
 0x7d3   : > { %v969_v63 = vrot.slane %v968_v62, 1 }
 0x7d5   : > { %v970_v0 = vadd.f32 %v969_v63, %v968_v62 }
 0x7d7   : > { %1450 = vrcp.f32 %v970_v0 }
 0x7e4   : > { %v1451_v1 = vpop.eup %1450 }
 0x7e5   : > { %v972_v2 = vmul.f32 %v1451_v1, %v1449_v57 }
 0x7e7   : > { %v973_v3 = vsel %vm407_vm4, %v972_v2, -inf }
 0x7e8   : > { %974 = vmax.xlane.f32.xlu1 %v973_v3 }
 0x865   : > { %v897_v4 = vpop.f32.mrf.mxu1 }
 0x866   : > { %v903_v5 = vadd.f32 %v897_v4, %v1852_v58 }
 0x867   : > { %v1313_v6 = vpop.f32.mrf.mxu1 }
 0x869   : > { %v900_v8 = vpop.f32.mrf.mxu1 }
 0x86b   : > { %v1314_v9 = vpop.f32.mrf.mxu1 }
 0x871   : > { %v975_v10 = vpop.xlane.xlu1 %974 }
 0x872   : > { %v976_v11 = vsub.f32 %v972_v2, %v975_v10 }
 0x874   : > { %v977_v12 = vmul.f32 1.442695, %v976_v11 }
 0x876   : > { %1452 = vpow2.f32 %v977_v12 }
 0x883   : > { %v1453_v13 = vpop.eup %1452 }
 0x884   : > { %v979_v14 = vsel %vm407_vm4, %v1453_v13, 0.0 }
 0x885   : > { %980 = vadd.xlane.f32.xlu0 %v979_v14 }
 0x89b   : > { %985 = vrot.lane.b32.xlu0 %v1798_v24, %s1621_s7 }
 0x90e   : > { %v981_v16 = vpop.xlane.xlu0 %980 }
 0x90f   : > { %1454 = vrcp.f32 %v981_v16 }
 0x912   : > { %v986_v58 = vpop.permute.xlu0 %985 }
 0x913   : > { %v991_v17 = vsel %vm442_vm2, %v986_v58, 0 }
 0x914   : > { %1322 = vmatpush3.bf16.msra.mxu1 %v991_v17 }
 0x91c   : > { %v1455_v18 = vpop.eup %1454 }
 0x91d   : > { %v983_v19 = vmul.f32 %v1455_v18, %v1453_v13 }
 0x91f   : > { %v984_v20 = vpack.c.bf16 %v983_v19, %v983_v19 }
 0x921   : > { %1324 = vmatmul.mubr.msk.bf16.vlgmr.msra.gmra.mxu1 %vm407_vm4, %v984_v20 }
 0x9e1   : > { %v1027_v22 = vpop.f32.mrf.mxu1 }
 0x9e2   : > { %v1033_v23 = vpack.c.bf16 %v1027_v22, %v1027_v22 }
 0x9e3   : > { %v1325_v25 = vpop.f32.mrf.mxu1 }
 0x9e4   : > { %1330 = vmatmul.mubr.msk.bf16.vlgmr.msra.gmra.mxu0 %vm360_vm3, %v1033_v23 }
 0x9e5   : > { %v1030_v24 = vpop.f32.mrf.mxu1 }
 0x9e7   : > { %v1326_v26 = vpop.f32.mrf.mxu1 }
 0xaa4   : > { %v1080_v27 = vpop.f32.mrf.mxu0 }
 0xaa5   : > { %v1086_v29 = vadd.f32 %v1080_v27, %v903_v5 }
 0xaa6   : > { %v1331_v30 = vpop.f32.mrf.mxu0 }
 0xaa7   : > { %v1094_v31 = vadd.f32 %v1232_v28, %v1086_v29 }
 0xaa8   : > { %v1083_v32 = vpop.f32.mrf.mxu0 }
 0xaa9   : > { %1095 = vst.msk [vmem:[%s268_s23] sm:$0xff] %vm308_vm0, %v1094_v31 }
 0xaaa   : > { %v1332_v33 = vpop.f32.mrf.mxu0 }
 0xaab   : > { %1549 = shalt.err (!%p1546_p9)
}
 0xaac   : > { %s1550_s6 = scalar_lea.hbm %s1896_s10, 128  ;;  %s1554_s8 = scalar_lea.hbm %s1945_s5, 256 }
 0xaad   : > { %p1551_p13 = scmp.ne.s32.totalorder %s1896_s10, %s1550_s6  ;;  %p1555_p4 = scmp.lt.s32.totalorder %s1896_s10, %s1945_s5 }
 0xaae   : > { %p1556_p8 = scmp.lt.s32.totalorder %s1554_s8, %s1550_s6 }
 0xaaf   : > { %p1552_p5 = pnand %p1551_p13, %p1961_p0 }
 0xab0   : > { %p1557_p7 = por %p1556_p8, %p1555_p4 }
 0xab1   : > { %p1553_p10 = pneg %p1552_p5 }
 0xab3   : > { %p1558_p11 = pnand %p1557_p7, %p1553_p10 }
 0xab5   : > { %1561 = shalt.err (!%p1558_p11)
}
 0xab6   : > { %1343 = dma.vmem_to_hbm [thread:$0]  (%p1961_p0), %s1898_s27, 128, %s1896_s10, %s1097_s22  }
 0xab7 PF: > { %s1122_s11 = sand.u32 1, %s1592_s18   ;;  %p1962_p1 = scmp.ne.s32.totalorder %s1951_s25, 0 }
 0xab8   : > { %p1963_p2 = scmp.ge.s32.totalorder %s1604_s21, 2  ;;  %s1123_s23 = scalar_lea.sflag [#allocation4], %s1122_s11 }
 0xaba   : > { %p1357_p6 = pnand %p1963_p2, %p1962_p1 }
 0xabc   : > { %p1358_p12 = pneg %p1357_p6 }
 0xabe   : > { %1587 = dma.done.wait (%p1358_p12), %s1123_s23, 128  }
 0xabf   : > { %1589 = vsyncadd (%p1358_p12), %s1123_s23, 4294967168  ;;  %p19_p3 = scmp.ge.s32.totalorder %s1726_s17, 4   ;;  %s1964_s18 = smov %s1596_s19 }
 0xac0   : > { %s1965_s19 = smov %s1600_s20  ;;  %s1966_s20 = smov %s1735_s28 }
 0xac1   : > { %s1967_s21 = smov %s1726_s17  ;;  %21 = sbr.rel (!%p19_p3) target bundleno = 6 (0x6), region = 96 }
 0xac6   :  { %1128 = vsyncpa [#allocation3], 1 }
 0xac7   :  { %1130 = vsyncpa [#allocation3 + $0x1], 1 }
 0xac8   :  { %1131 = vsyncpa [#allocation6], 1 }
 0xac9   :  { %1132 = vsyncpa [#allocation4], 1 }
 0xaca   :  { %1134 = vsyncpa [#allocation4 + $0x1], 1 }

</bundles_post_ra>
